<compile_context>
chip_gen: v6e
topology: v6e:2x2x1
jax: 0.10.0
libtpu: 0.0.40
codegen_flags: <defaults>
</compile_context>

<pallas_src>
import jax
import jax.numpy as jnp
import numpy as np
from jax.experimental import pallas as pl
from jax.experimental.pallas import tpu as pltpu


def attention_kernel(x_ref, w_ref, o_ref):
    # x_ref block: (bt, S, D) -- native layout, D on lanes
    # w_ref:       (1, 1, D)  -- fused (Wk^T @ Wq^T) weight
    # o_ref block: (bt, S)    -- softmax scores over the seq axis
    x = x_ref[...].astype(jnp.float32)                 # upcast (bf16 inputs ok)
    w = w_ref[...].astype(jnp.float32)                 # (1, 1, D)

    # Fused linear: logits[b, s] = sum_d x[b, s, d] * w[d]
    # VPU multiply + cross-lane reduce over D (XLU); skipping the MXU is the
    # right call for a (*, 32) x (32, 1) contraction.
    logits = jnp.sum(x * w, axis=-1)                   # (bt, S)

    # Softmax over the sequence axis (lane axis of `logits`).
    m = jnp.max(logits, axis=-1, keepdims=True)        # (bt, 1)
    e = jnp.exp(logits - m)                            # EUP
    denom = jnp.sum(e, axis=-1, keepdims=True)         # (bt, 1)
    # Exact divide: rows sum to exactly 1; the VALU divide is not the bottleneck.
    o_ref[...] = (e / denom).astype(o_ref.dtype)


def fuse_attention_weights(wk_t, wq_t):
    """Fold the two bias-free Linears into one weight. Call ONCE at init.

    wk_t: (32, 8) = key_layer.weight.T ; wq_t: (8, 1) = query_layer.weight.T
    Returns (1, 1, 32) f32.
    """
    w = wk_t.astype(jnp.float32) @ wq_t.astype(jnp.float32)   # (D, 1)
    return w.reshape(1, 1, -1)                                 # (1, 1, D)


def _pick_bt(B, S, D, itemsize):
    """Batch rows per grid step: ~2 MiB x blocks, sublane-aligned, <= B."""
    row_bytes = S * D * itemsize
    target_block_bytes = 2 * 1024 * 1024
    bt = int(max(1, target_block_bytes // max(1, row_bytes)))
    bt = min(B, bt)
    if bt >= 8:
        bt = (bt // 8) * 8          # keep a multiple of 8 rows when chunking
    if bt >= B:
        return B
    return max(1, bt)


def attention_layer(x, w_fused, *, bt=None):
    """x: (B, S, 32) f32/bf16; w_fused: (1, 1, 32) from fuse_attention_weights."""
    B, S, D = x.shape
    assert w_fused.shape == (1, 1, D)

    if bt is None:
        bt = _pick_bt(B, S, D, x.dtype.itemsize)
    grid = (pl.cdiv(B, bt),)

    scores = pl.pallas_call(
        attention_kernel,
        out_shape=jax.ShapeDtypeStruct((B, S), x.dtype),
        grid_spec=pltpu.PrefetchScalarGridSpec(
            num_scalar_prefetch=0,
            grid=grid,
            in_specs=[
                # Native (B, S, D) layout: no HBM transpose before the kernel.
                pl.BlockSpec((bt, S, D), lambda b: (b, 0, 0)),
                pl.BlockSpec((1, 1, D), lambda b: (0, 0, 0)),
            ],
            # Lane-dense whenever S >= 128; at S=8 the store is masked but the
            # output stream is only 1/D of the input bytes, so it is negligible.
            out_specs=pl.BlockSpec((bt, S), lambda b: (b, 0)),
        ),
        compiler_params=pltpu.CompilerParams(
            # Batch-chunk axis shards across v7x's two TensorCores when >= 2 steps.
            dimension_semantics=("parallel",),
            # Raise v5e's 16 MiB default scoped limit; safe on v7x's 64 MiB physical.
            vmem_limit_bytes=32 * 1024 * 1024,
        ),
    )(x, w_fused)

    return scores[..., None]                            # (B, S, 1), like the PyTorch module


def attention_ref(x, wk_t, wq_t):
    key = x @ wk_t                                      # (B, S, 8)
    logits = key @ wq_t                                 # (B, S, 1)
    return jax.nn.softmax(logits, axis=1)


if __name__ == "__main__":
    rng = jax.random.PRNGKey(0)
    k_x, k_wk, k_wq = jax.random.split(rng, 3)

    B, S, D_IN, D_K = 2, 8, 32, 8

    x = jax.random.normal(k_x, (B, S, D_IN), dtype=jnp.float32)

    # Mimic torch.nn.Linear default init: U(-1/sqrt(fan_in), 1/sqrt(fan_in)), bias=False.
    bound_k = 1.0 / np.sqrt(D_IN)
    bound_q = 1.0 / np.sqrt(D_K)
    wk = jax.random.uniform(k_wk, (D_K, D_IN), minval=-bound_k, maxval=bound_k,
                            dtype=jnp.float32)          # key_layer.weight   (8, 32)
    wq = jax.random.uniform(k_wq, (1, D_K), minval=-bound_q, maxval=bound_q,
                            dtype=jnp.float32)          # query_layer.weight (1, 8)

    wk_t = wk.T                                          # (32, 8)
    wq_t = wq.T                                          # (8, 1)

    # Weight fusion happens once, outside the forward path.
    w_fused = fuse_attention_weights(wk_t, wq_t)         # (1, 1, 32)

    score = attention_layer(x, w_fused)
    score = jax.block_until_ready(score)

    # Correctness vs pure-JAX reference. Slightly relaxed tolerance only because
    # the Wk^T@Wq^T pre-fusion reassociates the reduction (softmax is exact).
    ref = attention_ref(x, wk_t, wq_t)
    np.testing.assert_allclose(np.asarray(score), np.asarray(ref), rtol=1e-3, atol=1e-5)
    assert score.shape == (B, S, 1)

    print("KERNEL_OK")
</pallas_src>

<mosaic_0001>
module attributes {stable_mosaic.version = 11 : i64} {
  func.func @attention_kernel(%arg0: i32, %arg1: memref<2x8x32xf32, #tpu.memory_space<vmem>>, %arg2: memref<1x1x32xf32, #tpu.memory_space<vmem>>, %arg3: memref<2x8xf32, #tpu.memory_space<vmem>>) attributes {dimension_semantics = [#tpu.dimension_semantics<parallel>], iteration_bounds = array<i64: 1>, scalar_prefetch = 0 : i64, scratch_operands = 0 : i64, tpu.core_type = #tpu.core_type<tc>, window_params = [{transform_indices = @transform_0, window_bounds = array<i64: 2, 8, 32>}, {pipeline_mode = #tpu.pipeline_mode<synchronous>, transform_indices = @transform_1, window_bounds = array<i64: 1, 1, 32>}, {transform_indices = @transform_2, window_bounds = array<i64: 2, 8>}]} {
    %c0 = arith.constant 0 : index
    %c0_0 = arith.constant 0 : index
    %c0_1 = arith.constant 0 : index
    %0 = vector.load %arg1[%c0, %c0_0, %c0_1] : memref<2x8x32xf32, #tpu.memory_space<vmem>>, vector<2x8x32xf32>
    %c0_2 = arith.constant 0 : index
    %c0_3 = arith.constant 0 : index
    %c0_4 = arith.constant 0 : index
    %1 = vector.load %arg2[%c0_2, %c0_3, %c0_4] : memref<1x1x32xf32, #tpu.memory_space<vmem>>, vector<1x1x32xf32>
    %2 = vector.broadcast %1 : vector<1x1x32xf32> to vector<2x8x32xf32>
    %3 = arith.mulf %0, %2 : vector<2x8x32xf32>
    %cst = arith.constant dense<0.000000e+00> : vector<2x8xf32>
    %4 = vector.multi_reduction <add>, %3, %cst [2] : vector<2x8x32xf32> to vector<2x8xf32>
    %cst_5 = arith.constant dense<0xFF800000> : vector<2xf32>
    %5 = vector.multi_reduction <maximumf>, %4, %cst_5 [1] : vector<2x8xf32> to vector<2xf32>
    %6 = vector.shape_cast %5 : vector<2xf32> to vector<2x1xf32>
    %7 = vector.broadcast %6 : vector<2x1xf32> to vector<2x8xf32>
    %8 = arith.subf %4, %7 : vector<2x8xf32>
    %9 = math.exp %8 : vector<2x8xf32>
    %cst_6 = arith.constant dense<0.000000e+00> : vector<2xf32>
    %10 = vector.multi_reduction <add>, %9, %cst_6 [1] : vector<2x8xf32> to vector<2xf32>
    %11 = vector.shape_cast %10 : vector<2xf32> to vector<2x1xf32>
    %12 = vector.broadcast %11 : vector<2x1xf32> to vector<2x8xf32>
    %13 = arith.divf %9, %12 : vector<2x8xf32>
    %c0_7 = arith.constant 0 : index
    %c0_8 = arith.constant 0 : index
    %14 = vector.load %arg3[%c0_7, %c0_8] : memref<2x8xf32, #tpu.memory_space<vmem>>, vector<2x8xf32>
    tpu.vector_store %arg3[%c0_7, %c0_8], %13 {strides = array<i32>} : memref<2x8xf32, #tpu.memory_space<vmem>>, vector<2x8xf32>,
    return
  }
  func.func @transform_0(%arg0: i32) -> (i32, i32, i32) {
    %c0_i32 = arith.constant 0 : i32
    %c0_i32_0 = arith.constant 0 : i32
    %c0_i32_1 = arith.constant 0 : i32
    return %arg0, %c0_i32, %c0_i32_0 : i32, i32, i32
  }
  func.func @transform_1(%arg0: i32) -> (i32, i32, i32) {
    %c0_i32 = arith.constant 0 : i32
    %c0_i32_0 = arith.constant 0 : i32
    %c0_i32_1 = arith.constant 0 : i32
    %c0_i32_2 = arith.constant 0 : i32
    return %c0_i32, %c0_i32_0, %c0_i32_1 : i32, i32, i32
  }
  func.func @transform_2(%arg0: i32) -> (i32, i32) {
    %c0_i32 = arith.constant 0 : i32
    %c0_i32_0 = arith.constant 0 : i32
    return %arg0, %c0_i32 : i32, i32
  }
}

</mosaic_0001>

<bundles_post_ra>
// kernel: tpu_custom_call.1
= control target key start
LH: loop header
LB: loop body
LE: loop exit
PB: predicated region body
PF: predicated region fallthrough
CT: control target
= control target key end

     0   :  { %7 = vsyncpa [#allocation3], 0  ;;  %s245_s0 = inlined_call_operand.hbm [shape: f32[2,8,32], index: 0, kind: input, shape index: {}]   ;;  %s246_s1 = inlined_call_operand.vmem [shape: f32[1,1,32], index: 1, kind: input, shape index: {}]   ;;  %s247_s2 = inlined_call_operand.hbm [shape: f32[2,8], index: 2, kind: output, shape index: {}]  }
   0x1   :  { %8 = vsyncpa [#allocation4], 0  ;;  %s210_s9 = smov [#allocation2]  }
   0x2   :  { %s14_s10 = sshll.u32 %s210_s9, 4  ;;  %s15_s10 = int_to_ptr.vmem [resolvable:$true] %s14_s10 }
   0x3   :  { %s174_s11 = scalar_lea.vmem %s15_s10, 256  ;;  %p179_p1 = scmp.lt.s32.totalorder %s15_s10, %s15_s10 }
   0x4   :  { %p175_p0 = scmp.ne.s32.totalorder %s15_s10, %s174_s11  ;;  %p180_p2 = scmp.lt.s32.totalorder %s174_s11, %s174_s11 }
   0x6   :  { %p181_p3 = por %p180_p2, %p179_p1 }
   0x8   :  { %p182_p4 = pnand %p181_p3, %p175_p0 }
   0xa   :  { %185 = shalt.err (!%p182_p4)
}
   0xb   :  { %s211_s12 = smov 128   ;;  %s212_s13 = smov 8  }
   0xc   :  { %20 = dma.hbm_to_vmem [thread:$0]  %s245_s0, 256, %s15_s10, [#allocation3], %s211_s12, %s211_s12, %s212_s13  }
   0xd   :  { %206 = dma.done.wait [#allocation3], 256  }
   0xe   :  { %207 = vsyncadd [#allocation3], 4294967040  ;;  %v26_v0 = vld [vmem:[#allocation2] sm:$0xff]  ;;  %vm37_vm0 = vcmask 261120   ;;  %v27_v2 = vld [vmem:[#allocation2 + $0x8] sm:$0xff]  ;;  %v46_v7 = vlaneseq  ;;  %vm56_vm1 = vcmask 1041409  }
   0xf   :  { %v150_v1 = vld [vmem:[%s246_s1] ss:$0 sm:$0xff]  ;;  %vm59_vm2 = vcmask 58368   ;;  %v213_v17 = vmov 0   ;;  %s214_s0 = smov [#allocation5]  }
  0x10   :  { %v35_v3 = vmul.f32 %v150_v1, %v26_v0  ;;  %v36_v4 = vmul.f32 %v150_v1, %v27_v2  ;;  %v47_v8 = vand.u32 127, %v46_v7  ;;  %v49_v9 = vshrl.u32 %v46_v7, 7  ;;  %157 = vset.pattern.permute.xlu0 %v213_v17  ;;  %156 = vset.pattern.permute.xlu1 %v213_v17  ;;  %s141_s1 = sshll.u32 %s214_s0, 4  ;;  %s142_s1 = int_to_ptr.vmem [resolvable:$true] %s141_s1 }
  0x11   :  { %s186_s18 = scalar_lea.vmem %s142_s1, 32  ;;  %p191_p6 = scmp.lt.s32.totalorder %s142_s1, %s142_s1 }
  0x12   :  { %v38_v5 = vsel %vm37_vm0, %v35_v3, 0.0  ;;  %v41_v6 = vsel %vm37_vm0, %v36_v4, 0.0  ;;  %v50_v11 = vsub.s32 %v47_v8, %v49_v9  ;;  %v66_v18 = vsub.s32 0, %v49_v9  ;;  %p187_p5 = scmp.ne.s32.totalorder %s142_s1, %s186_s18  ;;  %p192_p7 = scmp.lt.s32.totalorder %s186_s18, %s186_s18 }
  0x13   :  { %39 = vadd.xlane.f32.xlu0 %v38_v5  ;;  %v70_v19 = vsub.s32 1, %v49_v9 }
  0x14   :  { %p193_p8 = por %p192_p7, %p191_p6 }
  0x16   :  { %p194_p9 = pnand %p193_p8, %p187_p5 }
  0x17   :  { %42 = vadd.xlane.f32.xlu0 %v41_v6 }
  0x9c   :  { %v40_v10 = vpop.xlane.xlu0 %39 }
  0x9d   :  { %v51_v13 = vrot.slane %v40_v10, %v50_v11 }
  0xa0   :  { %v43_v12 = vpop.xlane.xlu0 %42 }
  0xa1   :  { %v55_v14 = vrot.slane %v43_v12, %v50_v11 }
  0xa3   :  { %v57_v15 = vsel %vm56_vm1, %v55_v14, %v51_v13 }
  0xa4   :  { %v60_v16 = vsel %vm59_vm2, %v57_v15, -inf }
  0xa5   :  { %61 = vmax.xlane.f32.xlu1 %v60_v16 }
 0x12e   :  { %v62_v20 = vpop.xlane.xlu1 %61 }
 0x12f   :  { %v67_v21 = vrot.slane %v62_v20, %v66_v18  ;;  %v71_v22 = vrot.slane %v62_v20, %v70_v19 }
 0x131   :  { %v74_v23 = vsub.f32 %v40_v10, %v67_v21  ;;  %v75_v24 = vsub.f32 %v43_v12, %v71_v22 }
 0x133   :  { %v76_v25 = vmul.f32 1.442695, %v74_v23  ;;  %v78_v26 = vmul.f32 1.442695, %v75_v24 }
 0x135   :  { %158 = vpow2.f32 %v76_v25 }
 0x136   :  { %160 = vpow2.f32 %v78_v26 }
 0x142   :  { %v159_v27 = vpop.eup %158 }
 0x143   :  { %v161_v28 = vpop.eup %160  ;;  %83 = vperm.xlu1 %156, %v159_v27  }
 0x144   :  { %86 = vperm.xlu0 %157, %v161_v28  }
 0x1be   :  { %v84_v29 = vpop.permute.xlu1 %83 }
 0x1bf   :  { %v87_v30 = vpop.permute.xlu0 %86  ;;  %v91_v31 = vrot.slane %v84_v29, %v50_v11 }
 0x1c0   :  { %v95_v32 = vrot.slane %v87_v30, %v50_v11 }
 0x1c2   :  { %v96_v33 = vsel %vm56_vm1, %v95_v32, %v91_v31 }
 0x1c3   :  { %v98_v34 = vsel %vm59_vm2, %v96_v33, 0.0 }
 0x1c4   :  { %99 = vadd.xlane.f32.xlu1 %v98_v34 }
 0x24d   :  { %v100_v35 = vpop.xlane.xlu1 %99 }
 0x24e   :  { %v105_v36 = vrot.slane %v100_v35, %v66_v18  ;;  %v109_v37 = vrot.slane %v100_v35, %v70_v19 }
 0x250   :  { %162 = vrcp.f32 %v105_v36 }
 0x251   :  { %164 = vrcp.f32 %v109_v37 }
 0x25d   :  { %v163_v38 = vpop.eup %162 }
 0x25e   :  { %v113_v39 = vmul.f32 %v163_v38, %v159_v27  ;;  %v165_v40 = vpop.eup %164 }
 0x25f   :  { %v115_v41 = vmul.f32 %v165_v40, %v161_v28 }
 0x260   :  { %119 = vperm.xlu0 %157, %v113_v39  }
 0x264   :  { %122 = vperm.xlu0 %157, %v115_v41  }
 0x2db   :  { %v120_v42 = vpop.permute.xlu0 %119 }
 0x2dc   :  { %v127_v44 = vrot.slane %v120_v42, %v50_v11 }
 0x2df   :  { %v123_v43 = vpop.permute.xlu0 %122 }
 0x2e0   :  { %v131_v45 = vrot.slane %v123_v43, %v50_v11 }
 0x2e2   :  { %v132_v46 = vsel %vm56_vm1, %v131_v45, %v127_v44 }
 0x2e3   :  { %134 = vst.msk [vmem:[#allocation5] sm:$0x3] %vm59_vm2, %v132_v46 }
 0x2e4   :  { %197 = shalt.err (!%p194_p9)
}
 0x2e5   :  { %144 = dma.vmem_to_hbm [thread:$0]  %s142_s1, 32, %s247_s2, [#allocation4]  }
 0x2e6   :  { %208 = dma.done.wait [#allocation4], 32  }
 0x2e7   :  { %209 = vsyncadd [#allocation4], 4294967264 }
 0x2e8   :  { %148 = vsyncpa [#allocation3], 1 }
 0x2e9   :  { %149 = vsyncpa [#allocation4], 1 }

</bundles_post_ra>
